<compile_context>
chip_gen: v5e
topology: v5e:2x2
jax: 0.10.0
libtpu: 0.0.40
codegen_flags: <defaults>
</compile_context>

<pallas_src>
import numpy as np
import jax
import jax.numpy as jnp
from jax.experimental import pallas as pl
from jax.experimental.pallas import tpu as pltpu


# ----------------------------------------------------------------------------
# Host-side helpers: separable pooling / interpolation matrices (numpy).
# ----------------------------------------------------------------------------
def adaptive_pool_matrix(out_size: int, in_size: int) -> np.ndarray:
    """Row i averages input[start:end] with PyTorch AdaptiveAvgPool bin rules."""
    m = np.zeros((out_size, in_size), dtype=np.float32)
    for i in range(out_size):
        start = (i * in_size) // out_size
        end = -((-(i + 1) * in_size) // out_size)  # ceil((i+1)*in/out)
        m[i, start:end] = 1.0 / float(end - start)
    return m


def bilinear_upsample_matrix(out_size: int, in_size: int) -> np.ndarray:
    """1-D linear interpolation matrix, align_corners=True (the torch module
    explicitly passes align_corners=True, so these semantics are correct)."""
    m = np.zeros((out_size, in_size), dtype=np.float32)
    if in_size == 1:
        m[:, 0] = 1.0
        return m
    if out_size == 1:
        m[0, 0] = 1.0
        return m
    scale = (in_size - 1) / (out_size - 1)
    for i in range(out_size):
        src = i * scale
        i0 = min(int(np.floor(src)), in_size - 1)
        i1 = min(i0 + 1, in_size - 1)
        w1 = src - i0
        m[i, i0] += 1.0 - w1
        m[i, i1] += w1
    return m


def _round_up(x: int, m: int) -> int:
    return ((x + m - 1) // m) * m


def _vmem_capacity_bytes() -> int:
    """Generation-aware VMEM size; conservative fallback (v7x per-TC = 64 MiB)."""
    try:
        return int(pltpu.get_tpu_info().vmem_capacity_bytes)
    except Exception:
        return 64 * 1024 * 1024


def _pick_hw_tile(hw_pad: int, ctot: int, itemsize: int, budget_bytes: int) -> int:
    """Largest multiple-of-128 divisor of hw_pad whose output block fits budget."""
    assert hw_pad % 128 == 0
    best = 128
    max_cols = max(128, (budget_bytes // max(1, ctot * itemsize)) // 128 * 128)
    t = 128
    while t <= min(hw_pad, max_cols):
        if hw_pad % t == 0:
            best = t
        t += 128
    return best


SCALES = (1, 2, 3, 6)


def _branch_layout():
    sts = [s * s for s in SCALES]                 # [1, 4, 9, 36]
    offs = [0]
    for st in sts[:-1]:
        offs.append(offs[-1] + st)
    st_total = sum(sts)                           # 50
    st_pad = _round_up(max(st_total, 8), 8)       # 56
    return sts, offs, st_pad


def build_spatial_mats(H: int, W: int, hw_pad: int):
    """Concatenated Kronecker pooling / upsample matrices for all branches.

    phwT: (hw_pad, st_pad)  pooled = x_flat @ phwT     (pad rows/cols are zero)
    uhw : (st_pad, hw_pad)  feat   = y      @ uhw      (pad rows/cols are zero)
    """
    sts, offs, st_pad = _branch_layout()
    phwT = np.zeros((hw_pad, st_pad), np.float32)
    uhw = np.zeros((st_pad, hw_pad), np.float32)
    for s, off, st in zip(SCALES, offs, sts):
        ph = adaptive_pool_matrix(s, H)           # (s, H)
        pw = adaptive_pool_matrix(s, W)           # (s, W)
        uh = bilinear_upsample_matrix(H, s)       # (H, s)
        uw = bilinear_upsample_matrix(W, s)       # (W, s)
        phwT[: H * W, off: off + st] = np.kron(ph, pw).T
        uhw[off: off + st, : H * W] = np.kron(uh, uw).T
    return jnp.asarray(phwT), jnp.asarray(uhw)


# ----------------------------------------------------------------------------
# Forward: pooling prepass (Pallas) -> tiny XLA conv -> fused upsample (Pallas)
# ----------------------------------------------------------------------------
def pyramid_pooling_forward(x_nchw, w_all, bias_all, mask, phwT, uhw, *,
                            compute_dtype=jnp.bfloat16, hw_tile=None):
    """x_nchw: (B, C, H, W) -> (B, C + 4*Co, H, W) concat along channels."""
    B, C, H, W = x_nchw.shape
    Cb = w_all.shape[0]                  # 4 * Co
    Ctot = C + Cb
    HW = H * W
    hw_pad, st_pad = phwT.shape

    x_flat = x_nchw.reshape(B, C, HW)    # contiguous reshape (no data movement)
    if hw_pad != HW:
        # Pad HW up to a multiple of 128: keeps the output lane-dense and the
        # pipeline multi-step instead of a single full-HW block.
        x_flat = jnp.pad(x_flat, ((0, 0), (0, 0), (0, hw_pad - HW)))

    vmem_cap = _vmem_capacity_bytes()
    vmem_limit = int(min(vmem_cap * 3 // 4, 100 * 1024 * 1024))   # 48M v7x / 96M v5e,v6e
    out_itemsize = jnp.dtype(x_nchw.dtype).itemsize
    tile_budget = int(min(8 * 1024 * 1024, vmem_limit // 8))
    tile = hw_tile if hw_tile is not None else _pick_hw_tile(
        hw_pad, Ctot, out_itemsize, tile_budget)
    assert hw_pad % tile == 0 and tile % 128 == 0
    nj = hw_pad // tile

    use_f32 = (jnp.dtype(compute_dtype) == jnp.dtype(jnp.float32))
    pool_dot = dict(preferred_element_type=jnp.float32)
    up_dot = dict(preferred_element_type=jnp.float32)
    if use_f32:
        # f32 mode is the numerics-validation path; production default is bf16
        # (native MXU, no HIGHEST multi-pass emulation anywhere).
        pool_dot["precision"] = jax.lax.Precision.HIGHEST
        up_dot["precision"] = jax.lax.Precision.HIGHEST

    phwT_c = phwT.astype(compute_dtype)
    uhw_c = uhw.astype(compute_dtype)

    # ---- pass 1: pooled[b] = x_flat[b] @ phwT, tiled + accumulated over HW --
    def pool_kernel(x_ref, p_ref, pooled_ref):
        @pl.when(pl.program_id(1) == 0)
        def _():
            pooled_ref[...] = jnp.zeros_like(pooled_ref)
        pooled_ref[0] += jnp.dot(x_ref[0].astype(compute_dtype),
                                 p_ref[...], **pool_dot)

    pooled = pl.pallas_call(
        pool_kernel,
        out_shape=jax.ShapeDtypeStruct((B, C, st_pad), jnp.float32),
        grid_spec=pltpu.PrefetchScalarGridSpec(
            num_scalar_prefetch=0,
            grid=(B, nj),
            in_specs=[
                pl.BlockSpec((1, C, tile), lambda b, j: (b, 0, j)),
                pl.BlockSpec((tile, st_pad), lambda b, j: (j, 0)),
            ],
            out_specs=pl.BlockSpec((1, C, st_pad), lambda b, j: (b, 0, 0)),
        ),
        compiler_params=pltpu.CompilerParams(
            dimension_semantics=("parallel", "arbitrary"),  # j accumulates
            vmem_limit_bytes=vmem_limit,
        ),
    )(x_flat, phwT_c)

    # ---- 1x1 conv (BN folded) + ReLU + block-diagonal mask: tiny -> XLA -----
    # pooled is only (B, C, 56) floats; one fused (4Co, C) x (C, 56) matmul.
    conv_prec = jax.lax.Precision.HIGHEST if use_f32 else None
    y = jnp.einsum('oc,bcs->bos', w_all, pooled, precision=conv_prec)
    y = jnp.maximum(y + bias_all[None], 0.0) * mask[None]   # mask after ReLU
    y = y.astype(compute_dtype)           # cast hoisted out of the tile loop

    # ---- pass 2: pass-through copy + fused 4-branch upsample, lane-dense ----
    def psp_kernel(x_ref, y_ref, u_ref, o_ref):
        o_ref[0, :C, :] = x_ref[0].astype(o_ref.dtype)
        feat = jnp.dot(y_ref[0], u_ref[...], **up_dot)       # (4Co, tile) f32
        o_ref[0, C:, :] = feat.astype(o_ref.dtype)

    out = pl.pallas_call(
        psp_kernel,
        out_shape=jax.ShapeDtypeStruct((B, Ctot, hw_pad), x_nchw.dtype),
        grid_spec=pltpu.PrefetchScalarGridSpec(
            num_scalar_prefetch=0,
            grid=(B, nj),
            in_specs=[
                pl.BlockSpec((1, C, tile), lambda b, j: (b, 0, j)),
                pl.BlockSpec((1, Cb, st_pad), lambda b, j: (b, 0, 0)),
                pl.BlockSpec((st_pad, tile), lambda b, j: (0, j)),
            ],
            out_specs=pl.BlockSpec((1, Ctot, tile), lambda b, j: (b, 0, j)),
        ),
        compiler_params=pltpu.CompilerParams(
            # No carry across tiles -> both axes megacore-shardable (v7x).
            dimension_semantics=("parallel", "parallel"),
            vmem_limit_bytes=vmem_limit,
        ),
    )(x_flat, y, uhw_c)

    if hw_pad != HW:
        out = out[:, :, :HW]
    return out.reshape(B, Ctot, H, W)


# ----------------------------------------------------------------------------
# Module wrapper (folded BN params, cached spatial matrices) + JAX reference
# ----------------------------------------------------------------------------
class PyramidPoolingPallas:
    """JAX/Pallas equivalent of _PyramidPooling (BatchNorm eval-mode, folded)."""
    SCALES = SCALES

    def __init__(self, in_channels: int, key, compute_dtype=jnp.bfloat16):
        assert in_channels % 4 == 0
        self.in_channels = in_channels
        self.out_channels = in_channels // 4
        self.compute_dtype = compute_dtype     # bf16 default (production path)
        self.hw_tile = None                    # None -> auto
        eps = 1e-5
        keys = jax.random.split(key, len(self.SCALES))
        self.weights, self.biases = [], []
        for i, _ in enumerate(self.SCALES):
            # Conv2d(C, Co, 1, bias=False): torch weight (Co, C, 1, 1) -> (Co, C).
            w_t = jax.random.normal(keys[i], (self.out_channels, in_channels),
                                    dtype=jnp.float32) * 0.1
            # Deterministic, non-trivial BatchNorm eval-mode parameters.
            gamma = 1.0 + 0.05 * jnp.arange(self.out_channels, dtype=jnp.float32)
            beta = 0.01 * jnp.arange(self.out_channels, dtype=jnp.float32)
            running_mean = 0.02 * jnp.arange(self.out_channels, dtype=jnp.float32)
            running_var = jnp.ones((self.out_channels,), dtype=jnp.float32)
            scale = gamma / jnp.sqrt(running_var + eps)
            self.weights.append(w_t * scale[:, None])                          # (Co, C)
            self.biases.append((beta - running_mean * scale).reshape(-1, 1))   # (Co, 1)
        # Stacked fused-branch parameters (4Co, C) / (4Co, 1).
        self.w_all = jnp.concatenate(self.weights, axis=0)
        self.bias_all = jnp.concatenate(self.biases, axis=0)
        # Block-diagonal mask so the fused conv/upsample cannot mix branches.
        sts, offs, st_pad = _branch_layout()
        Co = self.out_channels
        m = np.zeros((4 * Co, st_pad), np.float32)
        for k, (off, st) in enumerate(zip(offs, sts)):
            m[k * Co:(k + 1) * Co, off:off + st] = 1.0
        self.mask = jnp.asarray(m)
        self._spatial_cache = {}

    def _spatial(self, H: int, W: int):
        key = (H, W)
        if key not in self._spatial_cache:
            hw_pad = _round_up(H * W, 128)
            self._spatial_cache[key] = build_spatial_mats(H, W, hw_pad)
        return self._spatial_cache[key]

    def __call__(self, x_nchw):
        B, C, H, W = x_nchw.shape
        assert C == self.in_channels
        phwT, uhw = self._spatial(H, W)
        return pyramid_pooling_forward(
            x_nchw, self.w_all, self.bias_all, self.mask, phwT, uhw,
            compute_dtype=self.compute_dtype, hw_tile=self.hw_tile)

    # Pure-JAX reference (per-branch separable einsums, f32 HIGHEST, NCHW).
    def reference(self, x_nchw):
        B, C, H, W = x_nchw.shape
        hp = jax.lax.Precision.HIGHEST
        x = x_nchw.astype(jnp.float32)
        feats = [x]
        for i, s in enumerate(self.SCALES):
            ph = jnp.asarray(adaptive_pool_matrix(s, H))
            pw = jnp.asarray(adaptive_pool_matrix(s, W))
            uh = jnp.asarray(bilinear_upsample_matrix(H, s))
            uw = jnp.asarray(bilinear_upsample_matrix(W, s))
            pooled = jnp.einsum('sh,bchw->bcsw', ph, x, precision=hp)
            pooled = jnp.einsum('tw,bcsw->bcst', pw, pooled, precision=hp)
            y = jnp.einsum('oc,bcst->bost', self.weights[i], pooled, precision=hp)
            y = jnp.maximum(y + self.biases[i][None, :, :, None], 0.0)
            feats.append(jnp.einsum('hs,wt,bost->bohw', uh, uw, y, precision=hp))
        return jnp.concatenate(feats, axis=1)


if __name__ == "__main__":
    key = jax.random.PRNGKey(0)
    k_x, k_mod, k_x2 = jax.random.split(key, 3)

    B, C, H, W = 2, 8, 16, 16                 # small NCHW input (C % 4 == 0)
    x = jax.random.normal(k_x, (B, C, H, W), dtype=jnp.float32)

    module = PyramidPoolingPallas(in_channels=C, key=k_mod)
    ref = jax.block_until_ready(module.reference(x))

    # 1) f32 numerics-validation path, forced 128-wide tiles (exercises tiling
    #    of x, the pooling accumulator and the fused-branch output store).
    module.compute_dtype = jnp.float32
    module.hw_tile = 128
    out_f32 = jax.block_until_ready(module(x))
    assert out_f32.shape == (B, 2 * C, H, W), out_f32.shape
    if not np.allclose(np.asarray(out_f32), np.asarray(ref), rtol=1e-4, atol=1e-4):
        raise AssertionError("f32 Pallas output does not match reference")

    # 2) production bf16 path (default dtype), auto tile size.
    module.compute_dtype = jnp.bfloat16
    module.hw_tile = None
    out_bf16 = jax.block_until_ready(module(x))
    if not np.allclose(np.asarray(out_bf16), np.asarray(ref), rtol=5e-2, atol=5e-2):
        raise AssertionError("bf16 Pallas output does not match reference")

    # 3) HW not a multiple of 128 -> zero-padded HW path (robustness fix).
    H2, W2 = 12, 10
    x2 = jax.random.normal(k_x2, (B, C, H2, W2), dtype=jnp.float32)
    module.compute_dtype = jnp.float32
    module.hw_tile = None
    ref2 = jax.block_until_ready(module.reference(x2))
    out2 = jax.block_until_ready(module(x2))
    assert out2.shape == (B, 2 * C, H2, W2), out2.shape
    if not np.allclose(np.asarray(out2), np.asarray(ref2), rtol=1e-4, atol=1e-4):
        raise AssertionError("padded-HW f32 Pallas output does not match reference")

    print("KERNEL_OK")
</pallas_src>

<mosaic_0001>
module attributes {stable_mosaic.version = 11 : i64} {
  func.func @pool_kernel(%arg0: i32, %arg1: i32, %arg2: memref<1x8x128xf32, #tpu.memory_space<vmem>>, %arg3: memref<128x56xf32, #tpu.memory_space<vmem>>, %arg4: memref<1x8x56xf32, #tpu.memory_space<vmem>>) attributes {dimension_semantics = [#tpu.dimension_semantics<parallel>, #tpu.dimension_semantics<arbitrary>], iteration_bounds = array<i64: 2, 2>, scalar_prefetch = 0 : i64, scratch_operands = 0 : i64, tpu.core_type = #tpu.core_type<tc>, window_params = [{transform_indices = @transform_0, window_bounds = array<i64: 1, 8, 128>}, {transform_indices = @transform_1, window_bounds = array<i64: 128, 56>}, {transform_indices = @transform_2, window_bounds = array<i64: 1, 8, 56>}]} {
    %c0_i32 = arith.constant 0 : i32
    %0 = arith.cmpi eq, %arg1, %c0_i32 : i32
    %1 = arith.extui %0 : i1 to i32
    %c0_i32_0 = arith.constant 0 : i32
    %2 = arith.cmpi ne, %1, %c0_i32_0 : i32
    scf.if %2 {
      %cst_11 = arith.constant 0.000000e+00 : f32
      %13 = vector.broadcast %cst_11 : f32 to vector<1x8x56xf32>
      %c0_12 = arith.constant 0 : index
      %c0_13 = arith.constant 0 : index
      %c0_14 = arith.constant 0 : index
      %14 = vector.load %arg4[%c0_12, %c0_13, %c0_14] : memref<1x8x56xf32, #tpu.memory_space<vmem>>, vector<1x8x56xf32>
      tpu.vector_store %arg4[%c0_12, %c0_13, %c0_14], %13 {strides = array<i32>} : memref<1x8x56xf32, #tpu.memory_space<vmem>>, vector<1x8x56xf32>,
    } else {
    }
    %c0 = arith.constant 0 : index
    %c0_1 = arith.constant 0 : index
    %c0_2 = arith.constant 0 : index
    %3 = vector.load %arg4[%c0, %c0_1, %c0_2] : memref<1x8x56xf32, #tpu.memory_space<vmem>>, vector<1x8x56xf32>
    %4 = vector.shape_cast %3 : vector<1x8x56xf32> to vector<8x56xf32>
    %c0_3 = arith.constant 0 : index
    %c0_4 = arith.constant 0 : index
    %c0_5 = arith.constant 0 : index
    %5 = vector.load %arg2[%c0_3, %c0_4, %c0_5] : memref<1x8x128xf32, #tpu.memory_space<vmem>>, vector<1x8x128xf32>
    %6 = vector.shape_cast %5 : vector<1x8x128xf32> to vector<8x128xf32>
    %c0_6 = arith.constant 0 : index
    %c0_7 = arith.constant 0 : index
    %7 = vector.load %arg3[%c0_6, %c0_7] : memref<128x56xf32, #tpu.memory_space<vmem>>, vector<128x56xf32>
    %cst = arith.constant dense<0.000000e+00> : vector<8x56xf32>
    %8 = tpu.matmul %6, %7, %cst {dimension_numbers = #tpu.dot_dimension_numbers<[1], [0], [0], [1], [0, 0, 1, 1], [], []>, precision = #tpu.contract_precision<fp32>} : vector<8x128xf32>, vector<128x56xf32>, vector<8x56xf32> -> vector<8x56xf32>
    %9 = arith.addf %4, %8 : vector<8x56xf32>
    %c0_8 = arith.constant 0 : index
    %c0_9 = arith.constant 0 : index
    %c0_10 = arith.constant 0 : index
    %10 = vector.load %arg4[%c0_8, %c0_9, %c0_10] : memref<1x8x56xf32, #tpu.memory_space<vmem>>, vector<1x8x56xf32>
    %11 = vector.shape_cast %10 : vector<1x8x56xf32> to vector<8x56xf32>
    %12 = vector.shape_cast %9 : vector<8x56xf32> to vector<1x8x56xf32>
    tpu.vector_store %arg4[%c0_8, %c0_9, %c0_10], %12 {strides = array<i32>} : memref<1x8x56xf32, #tpu.memory_space<vmem>>, vector<1x8x56xf32>,
    return
  }
  func.func @transform_0(%arg0: i32, %arg1: i32) -> (i32, i32, i32) {
    %c0_i32 = arith.constant 0 : i32
    %c0_i32_0 = arith.constant 0 : i32
    return %arg0, %c0_i32, %arg1 : i32, i32, i32
  }
  func.func @transform_1(%arg0: i32, %arg1: i32) -> (i32, i32) {
    %c0_i32 = arith.constant 0 : i32
    %c0_i32_0 = arith.constant 0 : i32
    return %arg1, %c0_i32 : i32, i32
  }
  func.func @transform_2(%arg0: i32, %arg1: i32) -> (i32, i32, i32) {
    %c0_i32 = arith.constant 0 : i32
    %c0_i32_0 = arith.constant 0 : i32
    %c0_i32_1 = arith.constant 0 : i32
    return %arg0, %c0_i32, %c0_i32_0 : i32, i32, i32
  }
}

</mosaic_0001>

<bundles_post_ra>
// kernel: tpu_custom_call.1
= control target key start
LH: loop header
LB: loop body
LE: loop exit
PB: predicated region body
PF: predicated region fallthrough
CT: control target
= control target key end

     0   :  { %7 = vsyncpa [#allocation3], 0  ;;  %s1251_s0 = inlined_call_operand.vmem [shape: f32[2,8,256], index: 0, kind: input, shape index: {}]   ;;  %s1252_s1 = inlined_call_operand.vmem [shape: f32[256,56], index: 1, kind: input, shape index: {}]   ;;  %s1253_s2 = inlined_call_operand.hbm [shape: f32[2,8,56], index: 2, kind: output, shape index: {}]  }
   0x1   :  { %9 = vsyncpa [#allocation3 + $0x1], 0  ;;  %s858_s9 = smov 0   ;;  %s860_s10 = smov 0  }
   0x2   :  { %s862_s11 = smov 0   ;;  %s864_s12 = smov 0  }
   0x3   :  { %s866_s13 = smov 0   ;;  %s868_s14 = smov 0  }
   0x4   :  { %s870_s15 = smov 0   ;;  %s872_s16 = smov 0  }
   0x5 LB: > { %s659_s17 = sadd.s32 4294967295, %s840_s16   ;;  %s660_s18 = sadd.s32 4294967294, %s840_s16   ;;  %s840_s16 = sphi %s872_s16, %s15_s16   ;;  %s836_s15 = sphi %s870_s15, %s1264_s15   ;;  %s832_s14 = sphi %s868_s14, %s1263_s14   ;;  %s828_s13 = sphi %s866_s13, %s1262_s13   ;;  %s824_s12 = sphi %s864_s12, %s1261_s12   ;;  %s820_s11 = sphi %s862_s11, %s1260_s11   ;;  %s816_s10 = sphi %s860_s10, %s1259_s10   ;;  %s812_s9 = sphi %s858_s9, %s1258_s9  }
   0x6   : > { %s24_s19 = sadd.s32 1, %s832_s14  ;;  %s27_s20 = sadd.s32 1, %s836_s15 }
   0x7   : > { %p25_p0 = scmp.ge.s32.totalorder %s24_s19, 2  ;;  %p98_p1 = scmp.ne.s32.totalorder %s820_s11, %s816_s10 }
   0x8   : > { %p99_p2 = scmp.eq.s32.totalorder %s659_s17, 3  ;;  %p104_p4 = scmp.ne.s32.totalorder %s816_s10, %s812_s9 }
   0x9   : > { %s1266_s19 = smov (%p25_p0, %s24_s19), 0  ;;  %s1268_s20 = smov (!%p25_p0, %s27_s20), %s836_s15 }
   0xa   : > { %p907_p3 = por %p99_p2, %p98_p1  ;;  %p29_p5 = scmp.ge.s32.totalorder %s1268_s20, 2 }
   0xb   : > { %p105_p6 = scmp.eq.s32.totalorder %s660_s18, 3  ;;  %p663_p7 = scmp.ge.s32.totalorder %s840_s16, 1 }
   0xc   : > { %p143_p8 = scmp.lt.s32.totalorder %s840_s16, 5  ;;  %s1270_s20 = smov (%p29_p5, %s1268_s20), 0 }
   0xd   : > { %p917_p9 = por %p105_p6, %p104_p4  ;;  %s85_s23 = ssub.s32 %s836_s15, %s1270_s20 }
   0xe   : > { %p144_p10 = pnand %p663_p7, %p143_p8  ;;  %s88_s24 = sadd.s32 1, %s820_s11 }
   0xf   : > { %p86_p11 = scmp.eq.s32.totalorder %s85_s23, 0  ;;  %s1254_s26 = sand.u32 (!%p144_p10), 1, %s816_s10  }
  0x10   : > { %147 = sbr.rel (%p144_p10) target bundleno = 240 (0xf0), region = 28  ;;  %p173_p12 = scmp.lt.s32.totalorder (!%p144_p10), %s828_s13, 1 }
  0x11   : > { %s925_s25 = scalar_select %p86_p11, %s820_s11, %s88_s24  }
  0x12   : > { %s664_s27 = sshll.u32 (!%p144_p10), %s1254_s26, 3  ;;  %p175_p13 = scmp.lt.s32.totalorder (!%p144_p10), %s824_s12, 1 }
  0x13   : > { %s667_s28 = sshll.u32 (!%p144_p10), %s824_s12, 4  ;;  %s945_s26 = scalar_lea.vmem (!%p144_p10), [#allocation2], %s664_s27 }
  0x14   : > { %p182_p0 = scmp.lt.s32.totalorder (!%p144_p10), %s667_s28, 31  ;;  %p669_p1 = scmp.ne.s32.totalorder (!%p144_p10), %s824_s12, 0 }
  0x15   : > { %s174_s29 = scalar_select %p173_p12, %s828_s13, 1 }
  0x16   : > { %s176_s30 = scalar_select %p175_p13, %s824_s12, 1 }
  0x17   : > { %s665_s3 = sshll.u32 %s174_s29, 1  ;;  %s1272_s28 = smov (!%p182_p0, %s667_s28), 31 }
  0x18   : > { %s178_s4 = sadd.s32 %s665_s3, %s176_s30  ;;  %s668_s17 = sshll.u32 %s1272_s28, 3 }
  0x19   : > { %s666_s5 = sshll.u32 %s178_s4, 3  ;;  %s943_s24 = scalar_lea.vmem %s1252_s1, %s668_s17 }
  0x1a   : > { %s938_s8 = scalar_lea.vmem %s1251_s0, %s666_s5  ;;  %190 = sbr.rel (%p669_p1) target bundleno = 33 (0x21), region = 32 }
  0x1f   : > { %vm191_vm0 = vcmask 457728   ;;  %v842_v0 = vmov 0.0  }
  0x20   : > { %192 = vst.msk [vmem:[%s945_s26] sm:$0xff] %vm191_vm0, %v842_v0 }
  0x21 PF: > { %v210_v1 = vld [vmem:[%s943_s24 + $0x78] sm:$0xff]  ;;  %v209_v2 = vld [vmem:[%s943_s24 + $0x70] sm:$0xff]  ;;  %v208_v3 = vld [vmem:[%s943_s24 + $0x68] sm:$0xff]  ;;  %s671_s12 = sshll.u32 %s828_s13, 3  ;;  %s568_s30 = sshll.u32 %s945_s26, 4  ;;  %vm553_vm1 = vcmask 457728   ;;  %s569_s30 = int_to_ptr.vmem [resolvable:$true] %s568_s30 }
  0x22   : > { %v952_v4 = vand.u32 4294901760, %v210_v1  ;;  %v954_v5 = vand.u32 4294901760, %v209_v2  ;;  %v956_v6 = vand.u32 4294901760, %v208_v3  ;;  %v207_v7 = vld [vmem:[%s943_s24 + $0x60] sm:$0xff]  ;;  %v206_v8 = vld [vmem:[%s943_s24 + $0x58] sm:$0xff]  ;;  %v205_v9 = vld [vmem:[%s943_s24 + $0x50] sm:$0xff]  ;;  %s566_s29 = scalar_lea.hbm %s1253_s2, %s671_s12 }
  0x23   : > { %v961_v10 = vand.u32 4294901760, %v207_v7  ;;  %v963_v11 = vand.u32 4294901760, %v206_v8  ;;  %v965_v12 = vand.u32 4294901760, %v205_v9  ;;  %v204_v13 = vld [vmem:[%s943_s24 + $0x48] sm:$0xff]  ;;  %v203_v14 = vld [vmem:[%s943_s24 + $0x40] sm:$0xff]  ;;  %v202_v19 = vld [vmem:[%s943_s24 + $0x38] sm:$0xff] }
  0x24   : > { %212 = vmatpush.msra.mxu0 %v952_v4  ;;  %v971_v15 = vsub.f32 %v210_v1, %v952_v4  ;;  %v974_v16 = vsub.f32 %v209_v2, %v954_v5  ;;  %v977_v17 = vsub.f32 %v208_v3, %v956_v6  ;;  %v979_v18 = vand.u32 4294901760, %v204_v13  ;;  %408 = vmatpush.msra.mxu3 %v952_v4  ;;  %v201_v27 = vld [vmem:[%s943_s24 + $0x30] sm:$0xff]  ;;  %v200_v37 = vld [vmem:[%s943_s24 + $0x28] sm:$0xff]  ;;  %v199_v43 = vld [vmem:[%s943_s24 + $0x20] sm:$0xff]  ;;  %s570_s3 = sshll.u32 %s566_s29, 4  ;;  %s1257_s4 = sand.u32 1, %s816_s10   ;;  %s571_s3 = int_to_ptr.hbm [resolvable:$true] %s570_s3 }
  0x25   : > { %v984_v20 = vsub.f32 %v207_v7, %v961_v10  ;;  %v987_v21 = vsub.f32 %v206_v8, %v963_v11  ;;  %v990_v22 = vsub.f32 %v205_v9, %v965_v12  ;;  %v996_v26 = vand.u32 4294901760, %v203_v14  ;;  %v198_v48 = vld [vmem:[%s943_s24 + $0x18] sm:$0xff]  ;;  %v197_v56 = vld [vmem:[%s943_s24 + $0x10] sm:$0xff]  ;;  %v196_v61 = vld [vmem:[%s943_s24 + $0x8] sm:$0xff]  ;;  %s556_s13 = scalar_lea.sflag [#allocation3], %s1257_s4  ;;  %s760_s5 = sshra.s32 %s571_s3, 4  ;;  %s761_s5 = int_to_ptr.hbm [resolvable:$true] %s760_s5 }
  0x26   : > { %214 = vmatpush.msra.mxu0 %v954_v5  ;;  %v254_v23 = vand.u32 4294901760, %v971_v15  ;;  %v260_v24 = vand.u32 4294901760, %v974_v16  ;;  %v266_v25 = vand.u32 4294901760, %v977_v17  ;;  %355 = vmatpush.msra.mxu2 %v971_v15  ;;  %v1001_v29 = vand.u32 4294901760, %v202_v19  ;;  %v195_v2 = vld [vmem:[%s943_s24] sm:$0xff]  ;;  %s762_s6 = scalar_lea.hbm %s761_s5, 8  ;;  %p767_p6 = scmp.lt.s32.totalorder %s761_s5, %s1253_s2 }
  0x27   : > { %v272_v28 = vand.u32 4294901760, %v984_v20  ;;  %v1004_v30 = vsub.f32 %v204_v13, %v979_v18  ;;  %410 = vmatpush.msra.mxu3 %v954_v5  ;;  %v278_v34 = vand.u32 4294901760, %v987_v21  ;;  %v284_v35 = vand.u32 4294901760, %v990_v22  ;;  %v194_v8 = vld [vmem:[%s938_s8] sm:$0xff]  ;;  %p763_p2 = scmp.ne.s32.totalorder %s761_s5, %s762_s6  ;;  %s766_s17 = scalar_lea.hbm %s1253_s2, 16 }
  0x28   : > { %216 = vmatpush.msra.mxu0 %v956_v6  ;;  %v255_v31 = vsub.f32 %v971_v15, %v254_v23  ;;  %v261_v32 = vsub.f32 %v974_v16, %v260_v24  ;;  %v267_v33 = vsub.f32 %v977_v17, %v266_v25  ;;  %358 = vmatpush.msra.mxu2 %v974_v16  ;;  %v1020_v36 = vand.u32 4294901760, %v201_v27  ;;  %p768_p7 = scmp.lt.s32.totalorder %s766_s17, %s762_s6 }
  0x29   : > { %412 = vmatpush.msra.mxu3 %v956_v6  ;;  %v273_v40 = vsub.f32 %v984_v20, %v272_v28  ;;  %v1029_v41 = vsub.f32 %v203_v14, %v996_v26  ;;  %v290_v42 = vand.u32 4294901760, %v1004_v30  ;;  %v279_v45 = vsub.f32 %v987_v21, %v278_v34  ;;  %p764_p4 = pnand %p763_p2, %p907_p3 }
  0x2a   : > { %v256_v38 = vand.u32 4294901760, %v255_v31  ;;  %218 = vmatpush.msra.mxu0 %v961_v10  ;;  %v262_v39 = vand.u32 4294901760, %v261_v32  ;;  %361 = vmatpush.msra.mxu2 %v977_v17  ;;  %v268_v44 = vand.u32 4294901760, %v267_v33  ;;  %v1039_v46 = vand.u32 4294901760, %v200_v37  ;;  %p769_p8 = por %p768_p7, %p767_p6 }
  0x2b   : > { %414 = vmatpush.msra.mxu3 %v961_v10  ;;  %v1042_v47 = vsub.f32 %v202_v19, %v1001_v29  ;;  %v285_v49 = vsub.f32 %v990_v22, %v284_v35  ;;  %v274_v50 = vand.u32 4294901760, %v273_v40  ;;  %v296_v51 = vand.u32 4294901760, %v1029_v41  ;;  %p765_p5 = pneg %p764_p4 }
  0x2c   : > { %257 = vmatpush.msra.mxu1 %v256_v38  ;;  %220 = vmatpush.msra.mxu0 %v963_v11  ;;  %v1052_v52 = vand.u32 4294901760, %v199_v43  ;;  %v1055_v53 = vsub.f32 %v201_v27, %v1020_v36  ;;  %v291_v54 = vsub.f32 %v1004_v30, %v290_v42  ;;  %v1060_v55 = vand.u32 4294901760, %v198_v48 }
  0x2d   : > { %364 = vmatpush.msra.mxu2 %v984_v20  ;;  %416 = vmatpush.msra.mxu3 %v963_v11  ;;  %v280_v57 = vand.u32 4294901760, %v279_v45  ;;  %v302_v58 = vand.u32 4294901760, %v1042_v47  ;;  %v1068_v59 = vsub.f32 %v200_v37, %v1039_v46  ;;  %v286_v60 = vand.u32 4294901760, %v285_v49  ;;  %p770_p10 = pnand %p769_p8, %p765_p5 }
  0x2e   : > { %263 = vmatpush.msra.mxu1 %v262_v39  ;;  %222 = vmatpush.msra.mxu0 %v965_v12  ;;  %v297_v62 = vsub.f32 %v1029_v41, %v296_v51  ;;  %v308_v63 = vand.u32 4294901760, %v1055_v53  ;;  %v1078_v0 = vand.u32 4294901760, %v197_v56  ;;  %v1081_v1 = vsub.f32 %v199_v43, %v1052_v52 }
  0x2f   : > { %367 = vmatpush.msra.mxu2 %v987_v21  ;;  %418 = vmatpush.msra.mxu3 %v965_v12  ;;  %v292_v3 = vand.u32 4294901760, %v291_v54  ;;  %v1085_v7 = vsub.f32 %v198_v48, %v1060_v55  ;;  %v303_v9 = vsub.f32 %v1042_v47, %v302_v58  ;;  %v314_v13 = vand.u32 4294901760, %v1068_v59 }
  0x30   : > { %269 = vmatpush.msra.mxu1 %v268_v44  ;;  %224 = vmatpush.msra.mxu0 %v979_v18  ;;  %v1095_v14 = vand.u32 4294901760, %v196_v61  ;;  %v1097_v19 = vand.u32 4294901760, %v194_v8  ;;  %v1099_v27 = vand.u32 4294901760, %v195_v2  ;;  %v298_v31 = vand.u32 4294901760, %v297_v62 }
  0x31   : > { %370 = vmatpush.msra.mxu2 %v990_v22  ;;  %420 = vmatpush.msra.mxu3 %v979_v18  ;;  %v309_v32 = vsub.f32 %v1055_v53, %v308_v63  ;;  %v320_v33 = vand.u32 4294901760, %v1081_v1  ;;  %v1109_v37 = vsub.f32 %v197_v56, %v1078_v0  ;;  %v326_v38 = vand.u32 4294901760, %v1085_v7 }
  0x32   : > { %275 = vmatpush.msra.mxu1 %v274_v50  ;;  %226 = vmatpush.msra.mxu0 %v996_v26  ;;  %v304_v39 = vand.u32 4294901760, %v303_v9  ;;  %v315_v40 = vsub.f32 %v1068_v59, %v314_v13  ;;  %v1119_v43 = vsub.f32 %v196_v61, %v1095_v14  ;;  %v244_v44 = vsub.f32 %v194_v8, %v1097_v19 }
  0x33   : > { %373 = vmatpush.msra.mxu2 %v1004_v30  ;;  %422 = vmatpush.msra.mxu3 %v996_v26  ;;  %v310_v45 = vand.u32 4294901760, %v309_v32  ;;  %v321_v48 = vsub.f32 %v1081_v1, %v320_v33  ;;  %v332_v49 = vand.u32 4294901760, %v1109_v37  ;;  %v1130_v50 = vsub.f32 %v195_v2, %v1099_v27 }
  0x34   : > { %281 = vmatpush.msra.mxu1 %v280_v57  ;;  %228 = vmatpush.msra.mxu0 %v1001_v29  ;;  %v316_v54 = vand.u32 4294901760, %v315_v40  ;;  %v327_v56 = vsub.f32 %v1085_v7, %v326_v38  ;;  %v338_v57 = vand.u32 4294901760, %v1119_v43 }
  0x35   : > { %376 = vmatpush.msra.mxu2 %v1029_v41  ;;  %424 = vmatpush.msra.mxu3 %v1001_v29  ;;  %v322_v61 = vand.u32 4294901760, %v321_v48  ;;  %v333_v62 = vsub.f32 %v1109_v37, %v332_v49  ;;  %v344_v2 = vand.u32 4294901760, %v1130_v50 }
  0x36   : > { %287 = vmatpush.msra.mxu1 %v286_v60  ;;  %230 = vmatpush.msra.mxu0 %v1020_v36  ;;  %v245_v60 = vand.u32 4294901760, %v244_v44  ;;  %v339_v8 = vsub.f32 %v1119_v43, %v338_v57 }
  0x37   : > { %379 = vmatpush.msra.mxu2 %v1042_v47  ;;  %426 = vmatpush.msra.mxu3 %v1020_v36  ;;  %v345_v32 = vsub.f32 %v1130_v50, %v344_v2 }
  0x38   : > { %293 = vmatpush.msra.mxu1 %v292_v3  ;;  %232 = vmatpush.msra.mxu0 %v1039_v46  ;;  %v328_v3 = vand.u32 4294901760, %v327_v56  ;;  %v246_v9 = vsub.f32 %v244_v44, %v245_v60 }
  0x39   : > { %382 = vmatpush.msra.mxu2 %v1055_v53  ;;  %428 = vmatpush.msra.mxu3 %v1039_v46 }
  0x3a   : > { %299 = vmatpush.msra.mxu1 %v298_v31  ;;  %234 = vmatpush.msra.mxu0 %v1052_v52  ;;  %v334_v31 = vand.u32 4294901760, %v333_v62  ;;  %v247_v40 = vand.u32 4294901760, %v246_v9 }
  0x3b   : > { %385 = vmatpush.msra.mxu2 %v1068_v59  ;;  %430 = vmatpush.msra.mxu3 %v1052_v52 }
  0x3c   : > { %305 = vmatpush.msra.mxu1 %v304_v39  ;;  %236 = vmatpush.msra.mxu0 %v1060_v55  ;;  %v340_v39 = vand.u32 4294901760, %v339_v8 }
  0x3d   : > { %388 = vmatpush.msra.mxu2 %v1081_v1  ;;  %432 = vmatpush.msra.mxu3 %v1060_v55 }
  0x3e   : > { %311 = vmatpush.msra.mxu1 %v310_v45  ;;  %238 = vmatpush.msra.mxu0 %v1078_v0  ;;  %v346_v45 = vand.u32 4294901760, %v345_v32 }
  0x3f   : > { %391 = vmatpush.msra.mxu2 %v1085_v7  ;;  %434 = vmatpush.msra.mxu3 %v1078_v0 }
  0x40   : > { %317 = vmatpush.msra.mxu1 %v316_v54  ;;  %240 = vmatpush.msra.mxu0 %v1095_v14 }
  0x41   : > { %394 = vmatpush.msra.mxu2 %v1109_v37  ;;  %436 = vmatpush.msra.mxu3 %v1095_v14 }
  0x42   : > { %323 = vmatpush.msra.mxu1 %v322_v61  ;;  %242 = vmatpush.msra.mxu0 %v1099_v27 }
  0x43   : > { %397 = vmatpush.msra.mxu2 %v1119_v43  ;;  %438 = vmatpush.msra.mxu3 %v1099_v27 }
  0x44   : > { %449 = vmatpush.msrb.mxu0 %v254_v23  ;;  %329 = vmatpush.msra.mxu1 %v328_v3 }
  0x45   : > { %400 = vmatpush.msra.mxu2 %v1130_v50  ;;  %442 = vmatmul.f32.vlgmr.msra.gmra.mxu3 %v245_v60 }
  0x46   : > { %453 = vmatpush.msrb.mxu0 %v260_v24  ;;  %335 = vmatpush.msra.mxu1 %v334_v31 }
  0x47   : > { %403 = vmatmul.f32.vlgmr.msra.gmra.mxu2 %v244_v44  ;;  %248 = vmatmul.f32.vlgmr.msra.gmra.mxu0 %v247_v40 }
  0x48   : > { %457 = vmatpush.msrb.mxu0 %v266_v25  ;;  %341 = vmatpush.msra.mxu1 %v340_v39 }
  0x4a   : > { %461 = vmatpush.msrb.mxu0 %v272_v28  ;;  %347 = vmatpush.msra.mxu1 %v346_v45 }
  0x4b   : > { %349 = vmatmul.f32.vlgmr.msra.gmra.mxu1 %v1097_v19 }
  0x4c   : > { %516 = vmatpush.msrb.mxu1 %v952_v4  ;;  %465 = vmatpush.msrb.mxu0 %v278_v34 }
  0x4e   : > { %518 = vmatpush.msrb.mxu1 %v954_v5  ;;  %469 = vmatpush.msrb.mxu0 %v284_v35 }
  0x50   : > { %520 = vmatpush.msrb.mxu1 %v956_v6  ;;  %473 = vmatpush.msrb.mxu0 %v290_v42 }
  0x52   : > { %522 = vmatpush.msrb.mxu1 %v961_v10  ;;  %477 = vmatpush.msrb.mxu0 %v296_v51 }
  0x54   : > { %524 = vmatpush.msrb.mxu1 %v963_v11  ;;  %481 = vmatpush.msrb.mxu0 %v302_v58 }
  0x56   : > { %526 = vmatpush.msrb.mxu1 %v965_v12  ;;  %485 = vmatpush.msrb.mxu0 %v308_v63 }
  0x58   : > { %528 = vmatpush.msrb.mxu1 %v979_v18  ;;  %489 = vmatpush.msrb.mxu0 %v314_v13  ;;  %v193_v18 = vld [vmem:[%s945_s26] sm:$0xff] }
  0x5a   : > { %530 = vmatpush.msrb.mxu1 %v996_v26  ;;  %493 = vmatpush.msrb.mxu0 %v320_v33 }
  0x5c   : > { %532 = vmatpush.msrb.mxu1 %v1001_v29  ;;  %497 = vmatpush.msrb.mxu0 %v326_v38 }
  0x5e   : > { %534 = vmatpush.msrb.mxu1 %v1020_v36  ;;  %501 = vmatpush.msrb.mxu0 %v332_v49 }
  0x60   : > { %536 = vmatpush.msrb.mxu1 %v1039_v46  ;;  %505 = vmatpush.msrb.mxu0 %v338_v57 }
  0x62   : > { %538 = vmatpush.msrb.mxu1 %v1052_v52  ;;  %509 = vmatpush.msrb.mxu0 %v344_v2 }
  0x63   : > { %511 = vmatmul.f32.vlgmr.msrb.gmra.mxu0 %v1097_v19 }
  0x64   : > { %540 = vmatpush.msrb.mxu1 %v1060_v55 }
  0x66   : > { %542 = vmatpush.msrb.mxu1 %v1078_v0 }
  0x68   : > { %544 = vmatpush.msrb.mxu1 %v1095_v14 }
  0x6a   : > { %546 = vmatpush.msrb.mxu1 %v1099_v27 }
  0x6b   : > { %548 = vmatmul.f32.vlgmr.msrb.gmra.mxu1 %v1097_v19 }
  0xc4   : > { %v249_v5 = vpop.f32.mrf.mxu0 }
  0xc8   : > { %v350_v4 = vpop.f32.mrf.mxu1  ;;  %v443_v12 = vpop.f32.mrf.mxu3 }
  0xc9   : > { %v351_v6 = vadd.f32 %v350_v4, %v249_v5 }
  0xca   : > { %v404_v10 = vpop.f32.mrf.mxu2 }
  0xcb   : > { %v405_v11 = vadd.f32 %v404_v10, %v351_v6 }
  0xcd   : > { %v444_v15 = vadd.f32 %v443_v12, %v405_v11 }
  0xe0   : > { %v512_v16 = vpop.f32.mrf.mxu0 }
  0xe1   : > { %v513_v17 = vadd.f32 %v512_v16, %v444_v15 }
  0xe8   : > { %v549_v20 = vpop.f32.mrf.mxu1 }
  0xe9   : > { %v550_v21 = vadd.f32 %v549_v20, %v513_v17 }
  0xeb   : > { %v552_v22 = vadd.f32 %v550_v21, %v193_v18 }
  0xed   : > { %554 = vst.msk [vmem:[%s945_s26] sm:$0xff] %vm553_vm1, %v552_v22 }
  0xee   : > { %773 = shalt.err (!%p770_p10)
}
  0xef   : > { %674 = dma.vmem_to_hbm [thread:$0]  (%p907_p3), %s569_s30, 128, %s571_s3, %s556_s13  }
  0xf0 PF: > { %p680_p11 = scmp.ge.s32.totalorder %s840_s16, 2  ;;  %s582_s26 = sand.u32 1, %s812_s9  }
  0xf1   : > { %s583_s24 = scalar_lea.sflag [#allocation3], %s582_s26 }
  0xf2   : > { %p677_p12 = pnand %p680_p11, %p917_p9 }
  0xf4   : > { %p678_p13 = pneg %p677_p12 }
  0xf6   : > { %807 = dma.done.wait (%p678_p13), %s583_s24, 128  }
  0xf7   : > { %809 = vsyncadd (%p678_p13), %s583_s24, 4294967168  ;;  %s15_s16 = sadd.s32 1, %s840_s16   ;;  %s1258_s9 = smov %s816_s10 }
  0xf8   : > { %p12_p0 = scmp.ge.s32.totalorder %s15_s16, 6   ;;  %s1259_s10 = smov %s820_s11 }
  0xf9   : > { %s1260_s11 = smov %s925_s25  ;;  %s1261_s12 = smov %s832_s14 }
  0xfa   : > { %s1262_s13 = smov %s836_s15  ;;  %s1263_s14 = smov %s1266_s19 }
  0xfb   : > { %s1264_s15 = smov %s1270_s20  ;;  %14 = sbr.rel (!%p12_p0) target bundleno = 5 (0x5), region = 70 }
 0x100   :  { %589 = vsyncpa [#allocation3], 1 }
 0x101   :  { %591 = vsyncpa [#allocation3 + $0x1], 1 }

</bundles_post_ra>
